<compile_context>
chip_gen: v6e
topology: v6e:2x2x1
jax: 0.10.0
libtpu: 0.0.40
codegen_flags: <defaults>
</compile_context>

<pallas_src>
import functools

import jax
import jax.numpy as jnp
from jax.experimental import pallas as pl
from jax.experimental.pallas import tpu as pltpu

LANE = 128
SUBLANE = 8


def _sublane_multiple(dtype) -> int:
    # f32 -> 8, bf16/f16 -> 16, int8/fp8 -> 32 (sub-32-bit packs along sublanes).
    bits = jnp.dtype(dtype).itemsize * 8
    return max(SUBLANE, 256 // bits)


def _chip_config():
    """Returns (target bytes per input block, usable TensorCores, vmem limit)."""
    try:
        kind = jax.devices()[0].device_kind.lower()
    except Exception:  # CPU / interpret fallback
        kind = ""
    if "v7" in kind:
        # 2 TCs/chip, 64 MiB VMEM/TC, 3.2 TB/s HBM: 2 MiB blocks + CORE_PARALLEL.
        return 2 << 20, 2, 48 << 20
    if "v6" in kind:
        # 1 TC, 128 MiB VMEM, ~1.4 TB/s: 2 MiB blocks, raise scoped limit.
        return 2 << 20, 1, 64 << 20
    if "v5" in kind:
        # v5e-class: 0.82 TB/s, 16 MiB default scoped limit -> modest 1 MiB blocks.
        return 1 << 20, 1, 32 << 20
    return 1 << 20, 1, 32 << 20  # unknown chip: conservative defaults


def _iou_kernel(x_ref, t_ref, out_ref, *, n_valid, tile_rows, tiles_per_chunk):
    c = pl.program_id(0)  # chunk (one per TensorCore on v7x)
    i = pl.program_id(1)  # row-tile within chunk (reduction axis, "arbitrary")

    @pl.when(i == 0)
    def _init():
        out_ref[...] = jnp.zeros_like(out_ref)

    tile_elems = tile_rows * LANE
    # int32 flat indexing; wrapper asserts n < 2**31.
    tile_id = c * tiles_per_chunk + i
    remaining = n_valid - tile_id * tile_elems  # valid elements in this tile

    x = jax.nn.sigmoid(x_ref[...].astype(jnp.float32))
    t = t_ref[...].astype(jnp.float32)

    groups = tile_rows // SUBLANE

    def _accumulate(xv, tv):
        # Defer the cross-sublane/lane reduction: accumulate into three full,
        # sublane-aligned (8,128) vreg slabs of the revisited output block.
        # Every RMW is an unmasked full-vreg load/add/store (pure VPU) that
        # co-issues with the streaming DMA.
        xg = xv.reshape(groups, SUBLANE, LANE)
        tg = tv.reshape(groups, SUBLANE, LANE)
        out_ref[0, 0] += jnp.sum(xg * tg, axis=0)   # partial sum(x*t)
        out_ref[0, 1] += jnp.sum(xg, axis=0)        # partial sum(x)
        out_ref[0, 2] += jnp.sum(tg, axis=0)        # partial sum(t)

    @pl.when(remaining >= tile_elems)
    def _full_tile():
        _accumulate(x, t)

    @pl.when(remaining < tile_elems)
    def _ragged_tile():
        # Boundary tile (or the duplicate tile a short chunk re-reads): mask
        # out everything past the valid flat length BEFORE the sums, which
        # also neutralizes lane/row padding and any OOB-read garbage.
        row = jax.lax.broadcasted_iota(jnp.int32, (tile_rows, LANE), 0)
        col = jax.lax.broadcasted_iota(jnp.int32, (tile_rows, LANE), 1)
        valid = row * LANE + col < remaining
        _accumulate(jnp.where(valid, x, 0.0), jnp.where(valid, t, 0.0))


@functools.partial(jax.jit, static_argnames=("downcast_targets",))
def iou_loss(inputs, targets, smooth=1.0, *, downcast_targets=True):
    """Pallas TPU implementation of IoULoss.forward (sigmoid applied in-kernel)."""
    x = inputs.reshape(-1)   # native dtype (bf16 logits accepted without upcast)
    t = targets.reshape(-1)
    n = x.shape[0]
    if n >= 2**31:
        raise ValueError("iou_loss: flat element count must be < 2**31 (int32 indexing)")

    # Binary segmentation masks are exact in bf16 -> halve the target stream's
    # HBM bytes.  Pass downcast_targets=False to keep exact non-binary targets.
    if downcast_targets and jnp.dtype(t.dtype).itemsize > 2:
        t = t.astype(jnp.bfloat16)

    target_block_bytes, num_cores, vmem_limit = _chip_config()

    # Lane-dense (rows, 128) slab; rows rounded to the dtype packing requirement.
    sub = max(_sublane_multiple(x.dtype), _sublane_multiple(t.dtype))
    rows = int(pl.cdiv(n, LANE))
    rows_padded = int(pl.cdiv(rows, sub) * sub)
    pad = rows_padded * LANE - n
    if pad:  # rare unaligned case; padded values are masked in-kernel
        x = jnp.pad(x, (0, pad))
        t = jnp.pad(t, (0, pad))
    x2 = x.reshape(rows_padded, LANE)
    t2 = t.reshape(rows_padded, LANE)

    widest = max(jnp.dtype(x2.dtype).itemsize, jnp.dtype(t2.dtype).itemsize)
    target_rows = max(sub, (target_block_bytes // (LANE * widest)) // sub * sub)
    tile_rows = int(min(target_rows, rows_padded))

    total_tiles = int(pl.cdiv(rows_padded, tile_rows))
    num_chunks = num_cores if total_tiles >= num_cores else 1
    tiles_per_chunk = int(pl.cdiv(total_tiles, num_chunks))

    def in_map(c, i):
        # Clamp so a short chunk re-reads the last valid tile instead of going
        # out of range; its contribution is masked in-kernel (remaining <= 0).
        return (jnp.minimum(c * tiles_per_chunk + i, total_tiles - 1), 0)

    if num_chunks > 1:
        # Real per-TensorCore sharding of the chunk axis (v7x only).
        dim_sem = (getattr(pltpu, "CORE_PARALLEL", "parallel"),
                   getattr(pltpu, "ARBITRARY", "arbitrary"))
    else:
        dim_sem = ("arbitrary", "arbitrary")

    kernel = functools.partial(
        _iou_kernel,
        n_valid=int(n),
        tile_rows=tile_rows,
        tiles_per_chunk=tiles_per_chunk,
    )

    partials = pl.pallas_call(
        kernel,
        out_shape=jax.ShapeDtypeStruct((num_chunks, 3, SUBLANE, LANE), jnp.float32),
        grid_spec=pltpu.PrefetchScalarGridSpec(
            num_scalar_prefetch=0,
            grid=(num_chunks, tiles_per_chunk),
            in_specs=[
                pl.BlockSpec((tile_rows, LANE), in_map),
                pl.BlockSpec((tile_rows, LANE), in_map),
            ],
            out_specs=pl.BlockSpec((1, 3, SUBLANE, LANE), lambda c, i: (c, 0, 0, 0)),
        ),
        compiler_params=pltpu.CompilerParams(
            dimension_semantics=dim_sem,
            vmem_limit_bytes=vmem_limit,
        ),
    )(x2, t2)

    # Tiny epilogue: cross-chunk/sublane/lane reduce + scalar IoU math.
    sums = jnp.sum(partials, axis=(0, 2, 3))  # [sum(x*t), sum(x), sum(t)]
    intersection = sums[0]
    union = sums[1] + sums[2] - intersection
    return 1.0 - (intersection + smooth) / (union + smooth)


def iou_loss_ref(inputs, targets, smooth=1.0):
    x = jax.nn.sigmoid(inputs.astype(jnp.float32)).reshape(-1)
    t = targets.astype(jnp.float32).reshape(-1)
    intersection = jnp.sum(x * t)
    total = jnp.sum(x + t)
    union = total - intersection
    return 1.0 - (intersection + smooth) / (union + smooth)


if __name__ == "__main__":
    # Small shapes consistent with a segmentation head output: (N, C, H, W).
    B, C, H, W = 2, 4, 16, 16
    key = jax.random.PRNGKey(0)
    k1, k2 = jax.random.split(key)

    # "inputs" are raw logits (sigmoid applied inside the loss, as in the
    # PyTorch module); "targets" is a binary mask.
    inputs = jax.random.normal(k1, (B, C, H, W), dtype=jnp.float32)
    targets = (jax.random.uniform(k2, (B, C, H, W)) > 0.5).astype(jnp.float32)

    loss = jax.block_until_ready(iou_loss(inputs, targets))
    ref = jax.block_until_ready(iou_loss_ref(inputs, targets))

    assert jnp.allclose(loss, ref, atol=1e-5, rtol=1e-5), (loss, ref)
    print("KERNEL_OK")
</pallas_src>

<mosaic_0001>
module attributes {stable_mosaic.version = 11 : i64} {
  func.func @_iou_kernel(%arg0: i32, %arg1: i32, %arg2: memref<16x128xf32, #tpu.memory_space<vmem>>, %arg3: memref<16x128xbf16, #tpu.memory_space<vmem>>, %arg4: memref<1x3x8x128xf32, #tpu.memory_space<vmem>>) attributes {dimension_semantics = [#tpu.dimension_semantics<arbitrary>, #tpu.dimension_semantics<arbitrary>], iteration_bounds = array<i64: 1, 1>, scalar_prefetch = 0 : i64, scratch_operands = 0 : i64, tpu.core_type = #tpu.core_type<tc>, window_params = [{transform_indices = @transform_0, window_bounds = array<i64: 16, 128>}, {transform_indices = @transform_1, window_bounds = array<i64: 16, 128>}, {transform_indices = @transform_2, window_bounds = array<i64: 1, 3, 8, 128>}]} {
    %c0_i32 = arith.constant 0 : i32
    %0 = arith.cmpi eq, %arg1, %c0_i32 : i32
    %1 = arith.extui %0 : i1 to i32
    %c0_i32_0 = arith.constant 0 : i32
    %2 = arith.cmpi ne, %1, %c0_i32_0 : i32
    scf.if %2 {
      %cst_9 = arith.constant 0.000000e+00 : f32
      %21 = vector.broadcast %cst_9 : f32 to vector<1x3x8x128xf32>
      %c0_10 = arith.constant 0 : index
      %c0_11 = arith.constant 0 : index
      %c0_12 = arith.constant 0 : index
      %c0_13 = arith.constant 0 : index
      %22 = vector.load %arg4[%c0_10, %c0_11, %c0_12, %c0_13] : memref<1x3x8x128xf32, #tpu.memory_space<vmem>>, vector<1x3x8x128xf32>
      tpu.vector_store %arg4[%c0_10, %c0_11, %c0_12, %c0_13], %21 {strides = array<i32>} : memref<1x3x8x128xf32, #tpu.memory_space<vmem>>, vector<1x3x8x128xf32>,
    } else {
    }
    %c1_i32 = arith.constant 1 : i32
    %3 = arith.muli %arg0, %c1_i32 : i32
    %4 = arith.addi %3, %arg1 : i32
    %c2048_i32 = arith.constant 2048 : i32
    %5 = arith.muli %4, %c2048_i32 : i32
    %c2048_i32_1 = arith.constant 2048 : i32
    %6 = arith.subi %c2048_i32_1, %5 : i32
    %c0 = arith.constant 0 : index
    %c0_2 = arith.constant 0 : index
    %7 = vector.load %arg2[%c0, %c0_2] : memref<16x128xf32, #tpu.memory_space<vmem>>, vector<16x128xf32>
    %8 = arith.negf %7 : vector<16x128xf32>
    %9 = math.exp %8 : vector<16x128xf32>
    %cst = arith.constant 1.000000e+00 : f32
    %10 = vector.broadcast %cst : f32 to vector<16x128xf32>
    %11 = arith.addf %10, %9 : vector<16x128xf32>
    %12 = arith.divf %10, %11 : vector<16x128xf32>
    %c0_3 = arith.constant 0 : index
    %c0_4 = arith.constant 0 : index
    %13 = vector.load %arg3[%c0_3, %c0_4] : memref<16x128xbf16, #tpu.memory_space<vmem>>, vector<16x128xbf16>
    %14 = arith.extf %13 : vector<16x128xbf16> to vector<16x128xf32>
    %c2048_i32_5 = arith.constant 2048 : i32
    %15 = arith.cmpi sge, %6, %c2048_i32_5 : i32
    %16 = arith.extui %15 : i1 to i32
    %c0_i32_6 = arith.constant 0 : i32
    %17 = arith.cmpi ne, %16, %c0_i32_6 : i32
    scf.if %17 {
      %21 = vector.shape_cast %12 : vector<16x128xf32> to vector<2x8x128xf32>
      %22 = vector.shape_cast %14 : vector<16x128xf32> to vector<2x8x128xf32>
      %c0_9 = arith.constant 0 : index
      %c0_10 = arith.constant 0 : index
      %c0_11 = arith.constant 0 : index
      %c0_12 = arith.constant 0 : index
      %23 = vector.load %arg4[%c0_9, %c0_10, %c0_11, %c0_12] : memref<1x3x8x128xf32, #tpu.memory_space<vmem>>, vector<1x1x8x128xf32>
      %24 = vector.shape_cast %23 : vector<1x1x8x128xf32> to vector<8x128xf32>
      %25 = arith.mulf %21, %22 : vector<2x8x128xf32>
      %cst_13 = arith.constant dense<0.000000e+00> : vector<8x128xf32>
      %26 = vector.multi_reduction <add>, %25, %cst_13 [0] : vector<2x8x128xf32> to vector<8x128xf32>
      %27 = arith.addf %24, %26 : vector<8x128xf32>
      %c0_14 = arith.constant 0 : index
      %c0_15 = arith.constant 0 : index
      %c0_16 = arith.constant 0 : index
      %c0_17 = arith.constant 0 : index
      %28 = vector.load %arg4[%c0_14, %c0_15, %c0_16, %c0_17] : memref<1x3x8x128xf32, #tpu.memory_space<vmem>>, vector<1x1x8x128xf32>
      %29 = vector.shape_cast %28 : vector<1x1x8x128xf32> to vector<8x128xf32>
      %30 = vector.shape_cast %27 : vector<8x128xf32> to vector<1x1x8x128xf32>
      tpu.vector_store %arg4[%c0_14, %c0_15, %c0_16, %c0_17], %30 {strides = array<i32>} : memref<1x3x8x128xf32, #tpu.memory_space<vmem>>, vector<1x1x8x128xf32>,
      %c0_18 = arith.constant 0 : index
      %c1 = arith.constant 1 : index
      %c0_19 = arith.constant 0 : index
      %c0_20 = arith.constant 0 : index
      %31 = vector.load %arg4[%c0_18, %c1, %c0_19, %c0_20] : memref<1x3x8x128xf32, #tpu.memory_space<vmem>>, vector<1x1x8x128xf32>
      %32 = vector.shape_cast %31 : vector<1x1x8x128xf32> to vector<8x128xf32>
      %cst_21 = arith.constant dense<0.000000e+00> : vector<8x128xf32>
      %33 = vector.multi_reduction <add>, %21, %cst_21 [0] : vector<2x8x128xf32> to vector<8x128xf32>
      %34 = arith.addf %32, %33 : vector<8x128xf32>
      %c0_22 = arith.constant 0 : index
      %c1_23 = arith.constant 1 : index
      %c0_24 = arith.constant 0 : index
      %c0_25 = arith.constant 0 : index
      %35 = vector.load %arg4[%c0_22, %c1_23, %c0_24, %c0_25] : memref<1x3x8x128xf32, #tpu.memory_space<vmem>>, vector<1x1x8x128xf32>
      %36 = vector.shape_cast %35 : vector<1x1x8x128xf32> to vector<8x128xf32>
      %37 = vector.shape_cast %34 : vector<8x128xf32> to vector<1x1x8x128xf32>
      tpu.vector_store %arg4[%c0_22, %c1_23, %c0_24, %c0_25], %37 {strides = array<i32>} : memref<1x3x8x128xf32, #tpu.memory_space<vmem>>, vector<1x1x8x128xf32>,
      %c0_26 = arith.constant 0 : index
      %c2 = arith.constant 2 : index
      %c0_27 = arith.constant 0 : index
      %c0_28 = arith.constant 0 : index
      %38 = vector.load %arg4[%c0_26, %c2, %c0_27, %c0_28] : memref<1x3x8x128xf32, #tpu.memory_space<vmem>>, vector<1x1x8x128xf32>
      %39 = vector.shape_cast %38 : vector<1x1x8x128xf32> to vector<8x128xf32>
      %cst_29 = arith.constant dense<0.000000e+00> : vector<8x128xf32>
      %40 = vector.multi_reduction <add>, %22, %cst_29 [0] : vector<2x8x128xf32> to vector<8x128xf32>
      %41 = arith.addf %39, %40 : vector<8x128xf32>
      %c0_30 = arith.constant 0 : index
      %c2_31 = arith.constant 2 : index
      %c0_32 = arith.constant 0 : index
      %c0_33 = arith.constant 0 : index
      %42 = vector.load %arg4[%c0_30, %c2_31, %c0_32, %c0_33] : memref<1x3x8x128xf32, #tpu.memory_space<vmem>>, vector<1x1x8x128xf32>
      %43 = vector.shape_cast %42 : vector<1x1x8x128xf32> to vector<8x128xf32>
      %44 = vector.shape_cast %41 : vector<8x128xf32> to vector<1x1x8x128xf32>
      tpu.vector_store %arg4[%c0_30, %c2_31, %c0_32, %c0_33], %44 {strides = array<i32>} : memref<1x3x8x128xf32, #tpu.memory_space<vmem>>, vector<1x1x8x128xf32>,
    } else {
    }
    %c2048_i32_7 = arith.constant 2048 : i32
    %18 = arith.cmpi slt, %6, %c2048_i32_7 : i32
    %19 = arith.extui %18 : i1 to i32
    %c0_i32_8 = arith.constant 0 : i32
    %20 = arith.cmpi ne, %19, %c0_i32_8 : i32
    scf.if %20 {
      %21 = tpu.iota {dimensions = array<i32: 0>} : vector<16x128xi32>
      %22 = tpu.iota {dimensions = array<i32: 1>} : vector<16x128xi32>
      %c128_i32 = arith.constant 128 : i32
      %23 = vector.broadcast %c128_i32 : i32 to vector<16x128xi32>
      %24 = arith.muli %21, %23 : vector<16x128xi32>
      %25 = arith.addi %24, %22 : vector<16x128xi32>
      %26 = vector.broadcast %6 : i32 to vector<16x128xi32>
      %27 = arith.cmpi slt, %25, %26 : vector<16x128xi32>
      %cst_9 = arith.constant 0.000000e+00 : f32
      %28 = vector.broadcast %cst_9 : f32 to vector<16x128xf32>
      %29 = arith.select %27, %12, %28 : vector<16x128xi1>, vector<16x128xf32>
      %cst_10 = arith.constant 0.000000e+00 : f32
      %30 = vector.broadcast %cst_10 : f32 to vector<16x128xf32>
      %31 = arith.select %27, %14, %30 : vector<16x128xi1>, vector<16x128xf32>
      %32 = vector.shape_cast %29 : vector<16x128xf32> to vector<2x8x128xf32>
      %33 = vector.shape_cast %31 : vector<16x128xf32> to vector<2x8x128xf32>
      %c0_11 = arith.constant 0 : index
      %c0_12 = arith.constant 0 : index
      %c0_13 = arith.constant 0 : index
      %c0_14 = arith.constant 0 : index
      %34 = vector.load %arg4[%c0_11, %c0_12, %c0_13, %c0_14] : memref<1x3x8x128xf32, #tpu.memory_space<vmem>>, vector<1x1x8x128xf32>
      %35 = vector.shape_cast %34 : vector<1x1x8x128xf32> to vector<8x128xf32>
      %36 = arith.mulf %32, %33 : vector<2x8x128xf32>
      %cst_15 = arith.constant dense<0.000000e+00> : vector<8x128xf32>
      %37 = vector.multi_reduction <add>, %36, %cst_15 [0] : vector<2x8x128xf32> to vector<8x128xf32>
      %38 = arith.addf %35, %37 : vector<8x128xf32>
      %c0_16 = arith.constant 0 : index
      %c0_17 = arith.constant 0 : index
      %c0_18 = arith.constant 0 : index
      %c0_19 = arith.constant 0 : index
      %39 = vector.load %arg4[%c0_16, %c0_17, %c0_18, %c0_19] : memref<1x3x8x128xf32, #tpu.memory_space<vmem>>, vector<1x1x8x128xf32>
      %40 = vector.shape_cast %39 : vector<1x1x8x128xf32> to vector<8x128xf32>
      %41 = vector.shape_cast %38 : vector<8x128xf32> to vector<1x1x8x128xf32>
      tpu.vector_store %arg4[%c0_16, %c0_17, %c0_18, %c0_19], %41 {strides = array<i32>} : memref<1x3x8x128xf32, #tpu.memory_space<vmem>>, vector<1x1x8x128xf32>,
      %c0_20 = arith.constant 0 : index
      %c1 = arith.constant 1 : index
      %c0_21 = arith.constant 0 : index
      %c0_22 = arith.constant 0 : index
      %42 = vector.load %arg4[%c0_20, %c1, %c0_21, %c0_22] : memref<1x3x8x128xf32, #tpu.memory_space<vmem>>, vector<1x1x8x128xf32>
      %43 = vector.shape_cast %42 : vector<1x1x8x128xf32> to vector<8x128xf32>
      %cst_23 = arith.constant dense<0.000000e+00> : vector<8x128xf32>
      %44 = vector.multi_reduction <add>, %32, %cst_23 [0] : vector<2x8x128xf32> to vector<8x128xf32>
      %45 = arith.addf %43, %44 : vector<8x128xf32>
      %c0_24 = arith.constant 0 : index
      %c1_25 = arith.constant 1 : index
      %c0_26 = arith.constant 0 : index
      %c0_27 = arith.constant 0 : index
      %46 = vector.load %arg4[%c0_24, %c1_25, %c0_26, %c0_27] : memref<1x3x8x128xf32, #tpu.memory_space<vmem>>, vector<1x1x8x128xf32>
      %47 = vector.shape_cast %46 : vector<1x1x8x128xf32> to vector<8x128xf32>
      %48 = vector.shape_cast %45 : vector<8x128xf32> to vector<1x1x8x128xf32>
      tpu.vector_store %arg4[%c0_24, %c1_25, %c0_26, %c0_27], %48 {strides = array<i32>} : memref<1x3x8x128xf32, #tpu.memory_space<vmem>>, vector<1x1x8x128xf32>,
      %c0_28 = arith.constant 0 : index
      %c2 = arith.constant 2 : index
      %c0_29 = arith.constant 0 : index
      %c0_30 = arith.constant 0 : index
      %49 = vector.load %arg4[%c0_28, %c2, %c0_29, %c0_30] : memref<1x3x8x128xf32, #tpu.memory_space<vmem>>, vector<1x1x8x128xf32>
      %50 = vector.shape_cast %49 : vector<1x1x8x128xf32> to vector<8x128xf32>
      %cst_31 = arith.constant dense<0.000000e+00> : vector<8x128xf32>
      %51 = vector.multi_reduction <add>, %33, %cst_31 [0] : vector<2x8x128xf32> to vector<8x128xf32>
      %52 = arith.addf %50, %51 : vector<8x128xf32>
      %c0_32 = arith.constant 0 : index
      %c2_33 = arith.constant 2 : index
      %c0_34 = arith.constant 0 : index
      %c0_35 = arith.constant 0 : index
      %53 = vector.load %arg4[%c0_32, %c2_33, %c0_34, %c0_35] : memref<1x3x8x128xf32, #tpu.memory_space<vmem>>, vector<1x1x8x128xf32>
      %54 = vector.shape_cast %53 : vector<1x1x8x128xf32> to vector<8x128xf32>
      %55 = vector.shape_cast %52 : vector<8x128xf32> to vector<1x1x8x128xf32>
      tpu.vector_store %arg4[%c0_32, %c2_33, %c0_34, %c0_35], %55 {strides = array<i32>} : memref<1x3x8x128xf32, #tpu.memory_space<vmem>>, vector<1x1x8x128xf32>,
    } else {
    }
    return
  }
  func.func @transform_0(%arg0: i32, %arg1: i32) -> (i32, i32) {
    %c1_i32 = arith.constant 1 : i32
    %0 = arith.muli %arg0, %c1_i32 : i32
    %1 = arith.addi %0, %arg1 : i32
    %c0_i32 = arith.constant 0 : i32
    %2 = arith.minsi %1, %c0_i32 : i32
    %c0_i32_0 = arith.constant 0 : i32
    %c0_i32_1 = arith.constant 0 : i32
    return %2, %c0_i32_0 : i32, i32
  }
  func.func @transform_1(%arg0: i32, %arg1: i32) -> (i32, i32) {
    %c1_i32 = arith.constant 1 : i32
    %0 = arith.muli %arg0, %c1_i32 : i32
    %1 = arith.addi %0, %arg1 : i32
    %c0_i32 = arith.constant 0 : i32
    %2 = arith.minsi %1, %c0_i32 : i32
    %c0_i32_0 = arith.constant 0 : i32
    %c0_i32_1 = arith.constant 0 : i32
    return %2, %c0_i32_0 : i32, i32
  }
  func.func @transform_2(%arg0: i32, %arg1: i32) -> (i32, i32, i32, i32) {
    %c0_i32 = arith.constant 0 : i32
    %c0_i32_0 = arith.constant 0 : i32
    %c0_i32_1 = arith.constant 0 : i32
    %c0_i32_2 = arith.constant 0 : i32
    return %arg0, %c0_i32, %c0_i32_0, %c0_i32_1 : i32, i32, i32, i32
  }
}

</mosaic_0001>

<bundles_post_ra>
// kernel: iou_loss.1
= control target key start
LH: loop header
LB: loop body
LE: loop exit
PB: predicated region body
PF: predicated region fallthrough
CT: control target
= control target key end

     0   :  { %s231_s0 = inlined_call_operand.vmem [shape: f32[16,128], index: 0, kind: input, shape index: {}]   ;;  %s232_s1 = inlined_call_operand.vmem [shape: bf16[16,128], index: 1, kind: input, shape index: {}]   ;;  %s233_s2 = inlined_call_operand.vmem [shape: f32[1,3,8,128], index: 2, kind: output, shape index: {}]  }
   0x1   :  { %v85_v0 = vld [vmem:[%s231_s0] sm:$0xff]  ;;  %v86_v1 = vld [vmem:[%s231_s0 + $0x8] sm:$0xff] }
   0x2   :  { %v186_v2 = vld [vmem:[%s232_s1] sm:$0xff]   ;;  %v175_v3 = vmul.f32 -1.442695, %v85_v0  ;;  %v176_v4 = vmul.f32 -1.442695, %v86_v1 }
   0x3   :  { %v187_v5 = vunpack.c.l.bf16 %v186_v2  ;;  %v188_v6 = vunpack.c.h.bf16 %v186_v2 }
   0x4   :  { %190 = vpow2.f32 %v175_v3 }
   0x5   :  { %v120_v7 = vadd.f32 %v188_v6, %v187_v5  ;;  %192 = vpow2.f32 %v176_v4 }
   0x7   :  { %180 = vst [vmem:[%s233_s2 + $0x10] sm:$0xff] %v120_v7 }
  0x11   :  { %v191_v8 = vpop.eup %190 }
  0x12   :  { %v193_v9 = vpop.eup %192  ;;  %v93_v10 = vadd.f32 1.0, %v191_v8 }
  0x13   :  { %v94_v11 = vadd.f32 1.0, %v193_v9 }
  0x14   :  { %194 = vrcp.f32 %v93_v10 }
  0x15   :  { %196 = vrcp.f32 %v94_v11 }
  0x21   :  { %v195_v12 = vpop.eup %194 }
  0x22   :  { %v197_v13 = vpop.eup %196  ;;  %v108_v14 = vmul.f32 %v195_v12, %v187_v5 }
  0x23   :  { %v109_v15 = vmul.f32 %v197_v13, %v188_v6  ;;  %v115_v16 = vadd.f32 %v197_v13, %v195_v12 }
  0x25   :  { %v110_v17 = vadd.f32 %v109_v15, %v108_v14  ;;  %178 = vst [vmem:[%s233_s2 + $0x8] sm:$0xff] %v115_v16 }
  0x27   :  { %112 = vst [vmem:[%s233_s2] sm:$0xff] %v110_v17 }

</bundles_post_ra>
